<compile_context>
chip_gen: v7x
topology: tpu7x:2x2x1
jax: 0.10.0
libtpu: 0.0.40
codegen_flags: <defaults>
</compile_context>

<pallas_src>
import functools

import jax
import jax.numpy as jnp
from jax.experimental import pallas as pl
from jax.experimental.pallas import tpu as pltpu

HIDDEN_DIM = 30          # hyperparas['hidden_dim']
LN_EPS = 1e-5            # torch.nn.LayerNorm default eps
_INV_N = 1.0 / HIDDEN_DIM  # LN statistics normalize over the 30 real features


def _round_up(n, m):
    return ((n + m - 1) // m) * m


def _linear_ln_relu(h, w_ref, b_ref, g_ref, beta_ref):
    """Linear -> LayerNorm(30 feats, biased var) -> ReLU on a (tm, 30) tile."""
    w = w_ref[...]
    lhs = h.astype(w.dtype) if h.dtype != w.dtype else h
    hm = jnp.dot(lhs, w, preferred_element_type=jnp.float32) + b_ref[...]
    # One-pass LN statistics.  NOTE: E[x^2] - E[x]^2 is less stable than the
    # two-pass form PyTorch uses for large-magnitude activations; inputs here
    # are unit-scale (data / previous-LayerNorm outputs) and var is clamped at
    # 0, which keeps this well inside a 1e-4 tolerance of the reference.
    s = jnp.sum(hm, axis=-1, keepdims=True)
    ss = jnp.sum(hm * hm, axis=-1, keepdims=True)
    mean = s * _INV_N
    var = jnp.maximum(ss * _INV_N - mean * mean, 0.0)
    inv_std = jax.lax.rsqrt(var + LN_EPS)                       # EUP slot, (tm, 1)
    # Direct form: (hm - mean) * inv_std * gamma + beta, then ReLU.
    return jnp.maximum((hm - mean) * inv_std * g_ref[...] + beta_ref[...], 0.0)


def resnet_block_kernel(x_ref,
                        w1_ref, b1_ref, g1_ref, be1_ref,
                        w2_ref, b2_ref, g2_ref, be2_ref,
                        o_ref):
    x = x_ref[...]                                              # (tm, 30) f32
    h = _linear_ln_relu(x, w1_ref, b1_ref, g1_ref, be1_ref)
    h = _linear_ln_relu(h, w2_ref, b2_ref, g2_ref, be2_ref)
    o_ref[...] = (x + h).astype(o_ref.dtype)                    # residual add


def prep_params(params, matmul_dtype=jnp.bfloat16):
    """One-time param prep (hoisted out of the per-call path).

    Weights are stored (in, out) so the forward is x @ W, and are pre-cast to
    the MXU input dtype once.  Bias / gamma / beta stay f32 and are reshaped to
    (1, 30) rows.
    """
    def w(a):
        a = jnp.asarray(a, jnp.float32)
        assert a.shape == (HIDDEN_DIM, HIDDEN_DIM)
        return a.astype(matmul_dtype)

    def v(a):
        return jnp.asarray(a, jnp.float32).reshape(1, HIDDEN_DIM)

    return (w(params["w1"]), v(params["b1"]), v(params["g1"]), v(params["be1"]),
            w(params["w2"]), v(params["b2"]), v(params["g2"]), v(params["be2"]))


@functools.partial(jax.jit, static_argnames=("block_rows",))
def resnet_block(x, prepped, *, block_rows=2048):
    """x: (B, 30) float32.  prepped: output of prep_params()."""
    B, H = x.shape
    assert H == HIDDEN_DIM
    # Pad the batch only to a sublane multiple (8); any ragged last grid block
    # is masked by Pallas (row-independent compute, garbage rows never stored).
    bp = _round_up(B, 8)
    xf = x.astype(jnp.float32)
    xp = jnp.pad(xf, ((0, bp - B), (0, 0))) if bp != B else xf

    # Biggest tile that still leaves >= 2 grid steps when there is enough work,
    # so dimension_semantics=("parallel",) can split the batch across v7x's two
    # TensorCores.  VMEM at tm=2048: ~2 MiB in + ~2 MiB out (double-buffered,
    # lanes padded to 128 in VMEM only) + tiny resident weights.
    tm = min(block_rows, bp)
    if bp >= 16:
        tm = min(tm, _round_up(pl.cdiv(bp, 2), 8))
    grid = (pl.cdiv(bp, tm),)

    act_spec = pl.BlockSpec((tm, H), lambda i: (i, 0))
    wt_spec = pl.BlockSpec((H, H), lambda i: (0, 0))    # constant block -> VMEM-resident
    vec_spec = pl.BlockSpec((1, H), lambda i: (0, 0))

    param_bytes = sum(int(p.size) * p.dtype.itemsize for p in prepped)
    cost = pl.CostEstimate(
        flops=2 * 2 * bp * H * H,            # two (bp,30)@(30,30) matmuls
        transcendentals=2 * bp,              # one rsqrt per row per layer
        bytes_accessed=2 * bp * H * 4 + param_bytes,
    )

    out = pl.pallas_call(
        resnet_block_kernel,
        out_shape=jax.ShapeDtypeStruct((bp, H), jnp.float32),
        grid=grid,
        in_specs=[act_spec,
                  wt_spec, vec_spec, vec_spec, vec_spec,
                  wt_spec, vec_spec, vec_spec, vec_spec],
        out_specs=act_spec,
        compiler_params=pltpu.CompilerParams(
            dimension_semantics=("parallel",)),
        cost_estimate=cost,
    )(xp, *prepped)
    return out[:B].astype(x.dtype)


def init_params(key, hidden_dim):
    """Deterministic synthetic params mirroring nn.Linear / nn.LayerNorm shapes."""
    ks = jax.random.split(key, 6)
    bound = 1.0 / jnp.sqrt(hidden_dim)   # PyTorch Linear default init bound

    def lin_w(k):
        w = jax.random.uniform(k, (hidden_dim, hidden_dim),
                               minval=-bound, maxval=bound, dtype=jnp.float32)
        return jnp.transpose(w)           # (in, out) so forward is x @ W

    def lin_b(k):
        b = jax.random.uniform(k, (hidden_dim,),
                               minval=-bound, maxval=bound, dtype=jnp.float32)
        return b.reshape(1, hidden_dim)

    return {
        "w1": lin_w(ks[0]), "b1": lin_b(ks[1]),
        "w2": lin_w(ks[2]), "b2": lin_b(ks[3]),
        "g1": jnp.ones((1, hidden_dim), jnp.float32)
              + 0.01 * jax.random.normal(ks[4], (1, hidden_dim), jnp.float32),
        "be1": jnp.zeros((1, hidden_dim), jnp.float32),
        "g2": jnp.ones((1, hidden_dim), jnp.float32)
              + 0.01 * jax.random.normal(ks[5], (1, hidden_dim), jnp.float32),
        "be2": jnp.zeros((1, hidden_dim), jnp.float32),
    }


def reference(x, p):
    """Pure-JAX reference of the PyTorch forward."""
    out = x
    for w, b, g, be in ((p["w1"], p["b1"], p["g1"], p["be1"]),
                        (p["w2"], p["b2"], p["g2"], p["be2"])):
        h = out @ w + b
        mean = jnp.mean(h, axis=-1, keepdims=True)
        var = jnp.mean((h - mean) ** 2, axis=-1, keepdims=True)
        h = (h - mean) / jnp.sqrt(var + LN_EPS) * g + be
        out = jnp.maximum(h, 0.0)
    return x + out


if __name__ == "__main__":
    key = jax.random.PRNGKey(0)
    k_x, k_p, k_x2 = jax.random.split(key, 3)
    params = init_params(k_p, HIDDEN_DIM)

    prepped_f32 = prep_params(params, matmul_dtype=jnp.float32)
    prepped_bf16 = prep_params(params)                      # bf16 MXU default

    # Small batch (single grid step), f32 matmul path: tight tolerance.
    x_small = jax.random.normal(k_x, (8, HIDDEN_DIM), dtype=jnp.float32)
    out_small = jax.block_until_ready(resnet_block(x_small, prepped_f32))
    ref_small = reference(x_small, params)
    assert out_small.shape == x_small.shape
    assert jnp.allclose(out_small, ref_small, atol=1e-4, rtol=1e-4)

    # Larger, non-8-multiple batch: exercises the pad-to-8 + 2-step parallel grid.
    x_big = jax.random.normal(k_x2, (1037, HIDDEN_DIM), dtype=jnp.float32)
    ref_big = reference(x_big, params)
    out_big = jax.block_until_ready(resnet_block(x_big, prepped_f32))
    assert out_big.shape == x_big.shape
    assert jnp.allclose(out_big, ref_big, atol=1e-4, rtol=1e-4)

    # Default bf16 MXU path (LN + residual stay f32): mildly relaxed tolerance.
    out_bf16 = jax.block_until_ready(resnet_block(x_big, prepped_bf16))
    assert jnp.allclose(out_bf16, ref_big, atol=5e-2, rtol=5e-2)

    # Small tile -> cdiv grid with a ragged last block (masked, never stored).
    out_ragged = jax.block_until_ready(
        resnet_block(x_big, prepped_f32, block_rows=256))
    assert jnp.allclose(out_ragged, ref_big, atol=1e-4, rtol=1e-4)

    print("KERNEL_OK")
</pallas_src>

<mosaic_0001>
module attributes {stable_mosaic.version = 11 : i64} {
  func.func @resnet_block_kernel(%arg0: i32, %arg1: memref<8x30xf32, #tpu.memory_space<vmem>>, %arg2: memref<30x30xf32, #tpu.memory_space<vmem>>, %arg3: memref<1x30xf32, #tpu.memory_space<vmem>>, %arg4: memref<1x30xf32, #tpu.memory_space<vmem>>, %arg5: memref<1x30xf32, #tpu.memory_space<vmem>>, %arg6: memref<30x30xf32, #tpu.memory_space<vmem>>, %arg7: memref<1x30xf32, #tpu.memory_space<vmem>>, %arg8: memref<1x30xf32, #tpu.memory_space<vmem>>, %arg9: memref<1x30xf32, #tpu.memory_space<vmem>>, %arg10: memref<8x30xf32, #tpu.memory_space<vmem>>) attributes {dimension_semantics = [#tpu.dimension_semantics<parallel>], iteration_bounds = array<i64: 1>, scalar_prefetch = 0 : i64, scratch_operands = 0 : i64, tpu.core_type = #tpu.core_type<tc>, window_params = [{transform_indices = @transform_0, window_bounds = array<i64: 8, 30>}, {pipeline_mode = #tpu.pipeline_mode<synchronous>, transform_indices = @transform_1, window_bounds = array<i64: 30, 30>}, {pipeline_mode = #tpu.pipeline_mode<synchronous>, transform_indices = @transform_2, window_bounds = array<i64: 1, 30>}, {pipeline_mode = #tpu.pipeline_mode<synchronous>, transform_indices = @transform_3, window_bounds = array<i64: 1, 30>}, {pipeline_mode = #tpu.pipeline_mode<synchronous>, transform_indices = @transform_4, window_bounds = array<i64: 1, 30>}, {pipeline_mode = #tpu.pipeline_mode<synchronous>, transform_indices = @transform_5, window_bounds = array<i64: 30, 30>}, {pipeline_mode = #tpu.pipeline_mode<synchronous>, transform_indices = @transform_6, window_bounds = array<i64: 1, 30>}, {pipeline_mode = #tpu.pipeline_mode<synchronous>, transform_indices = @transform_7, window_bounds = array<i64: 1, 30>}, {pipeline_mode = #tpu.pipeline_mode<synchronous>, transform_indices = @transform_8, window_bounds = array<i64: 1, 30>}, {transform_indices = @transform_9, window_bounds = array<i64: 8, 30>}]} {
    %c0 = arith.constant 0 : index
    %c0_0 = arith.constant 0 : index
    %0 = vector.load %arg1[%c0, %c0_0] : memref<8x30xf32, #tpu.memory_space<vmem>>, vector<8x30xf32>
    %c0_1 = arith.constant 0 : index
    %c0_2 = arith.constant 0 : index
    %1 = vector.load %arg2[%c0_1, %c0_2] : memref<30x30xf32, #tpu.memory_space<vmem>>, vector<30x30xf32>
    %cst = arith.constant dense<0.000000e+00> : vector<8x30xf32>
    %2 = tpu.matmul %0, %1, %cst {dimension_numbers = #tpu.dot_dimension_numbers<[1], [0], [0], [1], [0, 0, 1, 1], [], []>} : vector<8x30xf32>, vector<30x30xf32>, vector<8x30xf32> -> vector<8x30xf32>
    %c0_3 = arith.constant 0 : index
    %c0_4 = arith.constant 0 : index
    %3 = vector.load %arg3[%c0_3, %c0_4] : memref<1x30xf32, #tpu.memory_space<vmem>>, vector<1x30xf32>
    %4 = vector.broadcast %3 : vector<1x30xf32> to vector<8x30xf32>
    %5 = arith.addf %2, %4 : vector<8x30xf32>
    %cst_5 = arith.constant dense<0.000000e+00> : vector<8xf32>
    %6 = vector.multi_reduction <add>, %5, %cst_5 [1] : vector<8x30xf32> to vector<8xf32>
    %7 = vector.shape_cast %6 : vector<8xf32> to vector<8x1xf32>
    %8 = arith.mulf %5, %5 : vector<8x30xf32>
    %cst_6 = arith.constant dense<0.000000e+00> : vector<8xf32>
    %9 = vector.multi_reduction <add>, %8, %cst_6 [1] : vector<8x30xf32> to vector<8xf32>
    %10 = vector.shape_cast %9 : vector<8xf32> to vector<8x1xf32>
    %cst_7 = arith.constant 0.0333333351 : f32
    %11 = vector.broadcast %cst_7 : f32 to vector<8x1xf32>
    %12 = arith.mulf %7, %11 : vector<8x1xf32>
    %cst_8 = arith.constant 0.0333333351 : f32
    %13 = vector.broadcast %cst_8 : f32 to vector<8x1xf32>
    %14 = arith.mulf %10, %13 : vector<8x1xf32>
    %15 = arith.mulf %12, %12 : vector<8x1xf32>
    %16 = arith.subf %14, %15 : vector<8x1xf32>
    %cst_9 = arith.constant 0.000000e+00 : f32
    %17 = vector.broadcast %cst_9 : f32 to vector<8x1xf32>
    %18 = arith.maximumf %16, %17 : vector<8x1xf32>
    %cst_10 = arith.constant 9.99999974E-6 : f32
    %19 = vector.broadcast %cst_10 : f32 to vector<8x1xf32>
    %20 = arith.addf %18, %19 : vector<8x1xf32>
    %21 = math.rsqrt %20 : vector<8x1xf32>
    %22 = vector.broadcast %12 : vector<8x1xf32> to vector<8x30xf32>
    %23 = arith.subf %5, %22 : vector<8x30xf32>
    %24 = vector.broadcast %21 : vector<8x1xf32> to vector<8x30xf32>
    %25 = arith.mulf %23, %24 : vector<8x30xf32>
    %c0_11 = arith.constant 0 : index
    %c0_12 = arith.constant 0 : index
    %26 = vector.load %arg4[%c0_11, %c0_12] : memref<1x30xf32, #tpu.memory_space<vmem>>, vector<1x30xf32>
    %27 = vector.broadcast %26 : vector<1x30xf32> to vector<8x30xf32>
    %28 = arith.mulf %25, %27 : vector<8x30xf32>
    %c0_13 = arith.constant 0 : index
    %c0_14 = arith.constant 0 : index
    %29 = vector.load %arg5[%c0_13, %c0_14] : memref<1x30xf32, #tpu.memory_space<vmem>>, vector<1x30xf32>
    %30 = vector.broadcast %29 : vector<1x30xf32> to vector<8x30xf32>
    %31 = arith.addf %28, %30 : vector<8x30xf32>
    %cst_15 = arith.constant 0.000000e+00 : f32
    %32 = vector.broadcast %cst_15 : f32 to vector<8x30xf32>
    %33 = arith.maximumf %31, %32 : vector<8x30xf32>
    %c0_16 = arith.constant 0 : index
    %c0_17 = arith.constant 0 : index
    %34 = vector.load %arg6[%c0_16, %c0_17] : memref<30x30xf32, #tpu.memory_space<vmem>>, vector<30x30xf32>
    %cst_18 = arith.constant dense<0.000000e+00> : vector<8x30xf32>
    %35 = tpu.matmul %33, %34, %cst_18 {dimension_numbers = #tpu.dot_dimension_numbers<[1], [0], [0], [1], [0, 0, 1, 1], [], []>} : vector<8x30xf32>, vector<30x30xf32>, vector<8x30xf32> -> vector<8x30xf32>
    %c0_19 = arith.constant 0 : index
    %c0_20 = arith.constant 0 : index
    %36 = vector.load %arg7[%c0_19, %c0_20] : memref<1x30xf32, #tpu.memory_space<vmem>>, vector<1x30xf32>
    %37 = vector.broadcast %36 : vector<1x30xf32> to vector<8x30xf32>
    %38 = arith.addf %35, %37 : vector<8x30xf32>
    %cst_21 = arith.constant dense<0.000000e+00> : vector<8xf32>
    %39 = vector.multi_reduction <add>, %38, %cst_21 [1] : vector<8x30xf32> to vector<8xf32>
    %40 = vector.shape_cast %39 : vector<8xf32> to vector<8x1xf32>
    %41 = arith.mulf %38, %38 : vector<8x30xf32>
    %cst_22 = arith.constant dense<0.000000e+00> : vector<8xf32>
    %42 = vector.multi_reduction <add>, %41, %cst_22 [1] : vector<8x30xf32> to vector<8xf32>
    %43 = vector.shape_cast %42 : vector<8xf32> to vector<8x1xf32>
    %cst_23 = arith.constant 0.0333333351 : f32
    %44 = vector.broadcast %cst_23 : f32 to vector<8x1xf32>
    %45 = arith.mulf %40, %44 : vector<8x1xf32>
    %cst_24 = arith.constant 0.0333333351 : f32
    %46 = vector.broadcast %cst_24 : f32 to vector<8x1xf32>
    %47 = arith.mulf %43, %46 : vector<8x1xf32>
    %48 = arith.mulf %45, %45 : vector<8x1xf32>
    %49 = arith.subf %47, %48 : vector<8x1xf32>
    %cst_25 = arith.constant 0.000000e+00 : f32
    %50 = vector.broadcast %cst_25 : f32 to vector<8x1xf32>
    %51 = arith.maximumf %49, %50 : vector<8x1xf32>
    %cst_26 = arith.constant 9.99999974E-6 : f32
    %52 = vector.broadcast %cst_26 : f32 to vector<8x1xf32>
    %53 = arith.addf %51, %52 : vector<8x1xf32>
    %54 = math.rsqrt %53 : vector<8x1xf32>
    %55 = vector.broadcast %45 : vector<8x1xf32> to vector<8x30xf32>
    %56 = arith.subf %38, %55 : vector<8x30xf32>
    %57 = vector.broadcast %54 : vector<8x1xf32> to vector<8x30xf32>
    %58 = arith.mulf %56, %57 : vector<8x30xf32>
    %c0_27 = arith.constant 0 : index
    %c0_28 = arith.constant 0 : index
    %59 = vector.load %arg8[%c0_27, %c0_28] : memref<1x30xf32, #tpu.memory_space<vmem>>, vector<1x30xf32>
    %60 = vector.broadcast %59 : vector<1x30xf32> to vector<8x30xf32>
    %61 = arith.mulf %58, %60 : vector<8x30xf32>
    %c0_29 = arith.constant 0 : index
    %c0_30 = arith.constant 0 : index
    %62 = vector.load %arg9[%c0_29, %c0_30] : memref<1x30xf32, #tpu.memory_space<vmem>>, vector<1x30xf32>
    %63 = vector.broadcast %62 : vector<1x30xf32> to vector<8x30xf32>
    %64 = arith.addf %61, %63 : vector<8x30xf32>
    %cst_31 = arith.constant 0.000000e+00 : f32
    %65 = vector.broadcast %cst_31 : f32 to vector<8x30xf32>
    %66 = arith.maximumf %64, %65 : vector<8x30xf32>
    %67 = arith.addf %0, %66 : vector<8x30xf32>
    %c0_32 = arith.constant 0 : index
    %c0_33 = arith.constant 0 : index
    %68 = vector.load %arg10[%c0_32, %c0_33] : memref<8x30xf32, #tpu.memory_space<vmem>>, vector<8x30xf32>
    tpu.vector_store %arg10[%c0_32, %c0_33], %67 {strides = array<i32>} : memref<8x30xf32, #tpu.memory_space<vmem>>, vector<8x30xf32>,
    return
  }
  func.func @transform_0(%arg0: i32) -> (i32, i32) {
    %c0_i32 = arith.constant 0 : i32
    %c0_i32_0 = arith.constant 0 : i32
    return %arg0, %c0_i32 : i32, i32
  }
  func.func @transform_1(%arg0: i32) -> (i32, i32) {
    %c0_i32 = arith.constant 0 : i32
    %c0_i32_0 = arith.constant 0 : i32
    %c0_i32_1 = arith.constant 0 : i32
    return %c0_i32, %c0_i32_0 : i32, i32
  }
  func.func @transform_2(%arg0: i32) -> (i32, i32) {
    %c0_i32 = arith.constant 0 : i32
    %c0_i32_0 = arith.constant 0 : i32
    %c0_i32_1 = arith.constant 0 : i32
    return %c0_i32, %c0_i32_0 : i32, i32
  }
  func.func @transform_3(%arg0: i32) -> (i32, i32) {
    %c0_i32 = arith.constant 0 : i32
    %c0_i32_0 = arith.constant 0 : i32
    %c0_i32_1 = arith.constant 0 : i32
    return %c0_i32, %c0_i32_0 : i32, i32
  }
  func.func @transform_4(%arg0: i32) -> (i32, i32) {
    %c0_i32 = arith.constant 0 : i32
    %c0_i32_0 = arith.constant 0 : i32
    %c0_i32_1 = arith.constant 0 : i32
    return %c0_i32, %c0_i32_0 : i32, i32
  }
  func.func @transform_5(%arg0: i32) -> (i32, i32) {
    %c0_i32 = arith.constant 0 : i32
    %c0_i32_0 = arith.constant 0 : i32
    %c0_i32_1 = arith.constant 0 : i32
    return %c0_i32, %c0_i32_0 : i32, i32
  }
  func.func @transform_6(%arg0: i32) -> (i32, i32) {
    %c0_i32 = arith.constant 0 : i32
    %c0_i32_0 = arith.constant 0 : i32
    %c0_i32_1 = arith.constant 0 : i32
    return %c0_i32, %c0_i32_0 : i32, i32
  }
  func.func @transform_7(%arg0: i32) -> (i32, i32) {
    %c0_i32 = arith.constant 0 : i32
    %c0_i32_0 = arith.constant 0 : i32
    %c0_i32_1 = arith.constant 0 : i32
    return %c0_i32, %c0_i32_0 : i32, i32
  }
  func.func @transform_8(%arg0: i32) -> (i32, i32) {
    %c0_i32 = arith.constant 0 : i32
    %c0_i32_0 = arith.constant 0 : i32
    %c0_i32_1 = arith.constant 0 : i32
    return %c0_i32, %c0_i32_0 : i32, i32
  }
  func.func @transform_9(%arg0: i32) -> (i32, i32) {
    %c0_i32 = arith.constant 0 : i32
    %c0_i32_0 = arith.constant 0 : i32
    return %arg0, %c0_i32 : i32, i32
  }
}

</mosaic_0001>

<bundles_post_ra>
// kernel: resnet_block.1
= control target key start
LH: loop header
LB: loop body
LE: loop exit
PB: predicated region body
PF: predicated region fallthrough
CT: control target
= control target key end

     0   :  { %14 = vsyncpa [#allocation3], 0  ;;  %s648_s0 = inlined_call_operand.hbm [shape: f32[8,30], index: 0, kind: input, shape index: {}]   ;;  %s649_s1 = inlined_call_operand.hbm [shape: f32[30,30], index: 1, kind: input, shape index: {}]   ;;  %s650_s2 = inlined_call_operand.vmem [shape: f32[1,30], index: 2, kind: input, shape index: {}]   ;;  %s651_s3 = inlined_call_operand.vmem [shape: f32[1,30], index: 3, kind: input, shape index: {}]   ;;  %s652_s4 = inlined_call_operand.vmem [shape: f32[1,30], index: 4, kind: input, shape index: {}]   ;;  %s653_s5 = inlined_call_operand.hbm [shape: f32[30,30], index: 5, kind: input, shape index: {}]   ;;  %s654_s6 = inlined_call_operand.vmem [shape: f32[1,30], index: 6, kind: input, shape index: {}]   ;;  %s655_s7 = inlined_call_operand.vmem [shape: f32[1,30], index: 7, kind: input, shape index: {}]   ;;  %s656_s8 = inlined_call_operand.vmem [shape: f32[1,30], index: 8, kind: input, shape index: {}]   ;;  %s657_s9 = inlined_call_operand.hbm [shape: f32[8,30], index: 9, kind: output, shape index: {}]  }
   0x1   :  { %15 = vsyncpa [#allocation6], 0 }
   0x2   :  { %16 = vsyncpa [#allocation4], 0  ;;  %s497_s30 = smov [#allocation5]   ;;  %s403_s13 = scalar_lea.hbm %s649_s1, 512 }
   0x3   :  { %s32_s10 = sshll.u32 %s497_s30, 4  ;;  %p404_p0 = scmp.ne.s32.totalorder %s649_s1, %s403_s13  ;;  %s33_s10 = int_to_ptr.vmem [resolvable:$true] %s32_s10 }
   0x4   :  { %p407_p1 = scmp.lt.u32.totalorder %s403_s13, %s649_s1 }
   0x6   :  { %p409_p2 = pnand %p407_p1, %p404_p0 }
   0x8   :  { %412 = shalt.err (!%p409_p2)
}
   0x9   :  { %s413_s18 = scalar_lea.vmem %s33_s10, 512  ;;  %p418_p4 = scmp.lt.s32.totalorder %s33_s10, %s33_s10 }
   0xa   :  { %p414_p3 = scmp.ne.s32.totalorder %s33_s10, %s413_s18  ;;  %p419_p5 = scmp.lt.s32.totalorder %s413_s18, %s413_s18 }
   0xc   :  { %p420_p6 = por %p419_p5, %p418_p4 }
   0xe   :  { %p421_p7 = pnand %p420_p6, %p414_p3 }
  0x10   :  { %424 = shalt.err (!%p421_p7)
}
  0x11   :  { %s498_s19 = smov 128   ;;  %s499_s20 = smov 8  }
  0x12   :  { %38 = dma.hbm_to_vmem [thread:$0]  %s649_s1, 512, %s33_s10, [#allocation6], %s498_s19, %s498_s19, %s499_s20  }
  0x13   :  { %s500_s23 = smov [#allocation2]   ;;  %s501_s25 = smov [#allocation7]  }
  0x14   :  { %s23_s24 = sshll.u32 %s500_s23, 4  ;;  %s50_s26 = sshll.u32 %s501_s25, 4  ;;  %s24_s24 = int_to_ptr.vmem [resolvable:$true] %s23_s24  ;;  %s51_s26 = int_to_ptr.vmem [resolvable:$true] %s50_s26 }
  0x15   :  { %s425_s29 = scalar_lea.hbm %s648_s0, 128 }
  0x16   :  { %p426_p8 = scmp.ne.s32.totalorder %s648_s0, %s425_s29  ;;  %p429_p9 = scmp.lt.u32.totalorder %s425_s29, %s648_s0 }
  0x18   :  { %p431_p10 = pnand %p429_p9, %p426_p8 }
  0x1a   :  { %434 = shalt.err (!%p431_p10)
}
  0x1b   :  { %s435_s1 = scalar_lea.vmem %s24_s24, 128  ;;  %p440_p12 = scmp.lt.s32.totalorder %s24_s24, %s24_s24 }
  0x1c   :  { %p436_p11 = scmp.ne.s32.totalorder %s24_s24, %s435_s1  ;;  %p441_p13 = scmp.lt.s32.totalorder %s435_s1, %s435_s1 }
  0x1e   :  { %p442_p0 = por %p441_p13, %p440_p12 }
  0x20   :  { %p443_p1 = pnand %p442_p0, %p436_p11 }
  0x22   :  { %446 = shalt.err (!%p443_p1)
}
  0x23   :  { %26 = dma.hbm_to_vmem [thread:$0]  %s648_s0, 128, %s24_s24, [#allocation3]  }
  0x24   :  { %s447_s17 = scalar_lea.hbm %s653_s5, 512 }
  0x25   :  { %p448_p2 = scmp.ne.s32.totalorder %s653_s5, %s447_s17  ;;  %p451_p3 = scmp.lt.u32.totalorder %s447_s17, %s653_s5 }
  0x27   :  { %p453_p4 = pnand %p451_p3, %p448_p2 }
  0x29   :  { %456 = shalt.err (!%p453_p4)
}
  0x2a   :  { %s457_s25 = scalar_lea.vmem %s51_s26, 512  ;;  %p462_p6 = scmp.lt.s32.totalorder %s51_s26, %s51_s26 }
  0x2b   :  { %p458_p5 = scmp.ne.s32.totalorder %s51_s26, %s457_s25  ;;  %p463_p7 = scmp.lt.s32.totalorder %s457_s25, %s457_s25 }
  0x2d   :  { %p464_p8 = por %p463_p7, %p462_p6 }
  0x2f   :  { %p465_p9 = pnand %p464_p8, %p458_p5 }
  0x31   :  { %468 = shalt.err (!%p465_p9)
}
  0x32   :  { %56 = dma.hbm_to_vmem [thread:$0]  %s653_s5, 512, %s51_s26, [#allocation6], %s498_s19, %s498_s19, %s499_s20  }
  0x33   :  { %491 = dma.done.wait [#allocation3], 128  }
  0x34   :  { %492 = vsyncadd [#allocation3], 4294967168 }
  0x35   :  { %493 = dma.done.wait [#allocation6], 1024  }
  0x36   :  { %494 = vsyncadd [#allocation6], 4294966272  ;;  %v502_v0 = vmov 0.0|0.0   ;;  %vm503_vm0 = vmmov 0   ;;  %v504_v1 = vmov 0.0   ;;  %v73_v2 = vld [vmem:[#allocation5] sm:$0xff] }
  0x37   :  { %375 = vmatprep.subr.bf16.mxu0 %v502_v0  ;;  %382 = vmatprep.subr.bf16.mxu1 %v502_v0  ;;  %v74_v3 = vld [vmem:[#allocation5 + $0x8] sm:$0xff]  ;;  %v75_v4 = vld [vmem:[#allocation5 + $0x10] sm:$0xff]  ;;  %v76_v6 = vld [vmem:[#allocation5 + $0x18] sm:$0x3f]  ;;  %vm88_vm1 = vcmask 1045504   ;;  %vm505_vm2 = vmmov 1  }
  0x38   :  { %361 = vmatprep.mubr.msk.f32.mxu0 %vm503_vm0, %v504_v1  ;;  %372 = vmatprep.mubr.msk.f32.mxu1 %vm503_vm0, %v504_v1  ;;  %v376_v5 = vpack.c.bf16 %v74_v3, %v73_v2  ;;  %v379_v7 = vpack.c.bf16 %v76_v6, %v75_v4  ;;  %vm599_vm3 = vmpackc.low %vm88_vm1, %vm505_vm2  ;;  %v605_v9 = vld [vmem:[#allocation2] sm:$0xff]  ;;  %vm84_vm4 = vcmask 244736   ;;  %v195_v17 = vld [vmem:[#allocation7] sm:$0xff]  ;;  %s506_s11 = smov [#allocation8]  }
  0x39   :  { %v333_v10 = vld [vmem:[%s650_s2] ss:$0 sm:$0xff]  ;;  %v196_v18 = vld [vmem:[#allocation7 + $0x8] sm:$0xff]  ;;  %v197_v19 = vld [vmem:[#allocation7 + $0x10] sm:$0xff]  ;;  %s323_s12 = sshll.u32 %s506_s11, 4  ;;  %s324_s12 = int_to_ptr.vmem [resolvable:$true] %s323_s12 }
  0x3a   :  { %377 = vmatpush3.bf16.msra.mxu0 %v376_v5  ;;  %v383_v20 = vpack.c.bf16 %v196_v18, %v195_v17  ;;  %v198_v21 = vld [vmem:[#allocation7 + $0x18] sm:$0x3f]  ;;  %s469_s13 = scalar_lea.vmem %s324_s12, 128  ;;  %p474_p11 = scmp.lt.s32.totalorder %s324_s12, %s324_s12 }
  0x3b   :  { %378 = vmatprep.subr.bf16.mxu0 %v502_v0  ;;  %v386_v22 = vpack.c.bf16 %v198_v21, %v197_v19  ;;  %v336_v33 = vld [vmem:[%s651_s3] ss:$0 sm:$0xff]  ;;  %p470_p10 = scmp.ne.s32.totalorder %s324_s12, %s469_s13  ;;  %p475_p12 = scmp.lt.s32.totalorder %s469_s13, %s469_s13 }
  0x3c   :  { %384 = vmatpush3.bf16.msra.mxu1 %v383_v20  ;;  %v337_v35 = vld [vmem:[%s652_s4] ss:$0 sm:$0xff] }
  0x3d   :  { %385 = vmatprep.subr.bf16.mxu1 %v502_v0  ;;  %v338_v39 = vld [vmem:[%s654_s6] ss:$0 sm:$0xff]  ;;  %p476_p13 = por %p475_p12, %p474_p11 }
  0x3e   :  { %381 = vmatpush3.bf16.msk.msra.mxu0 %vm599_vm3, %v379_v7  ;;  %v341_v56 = vld [vmem:[%s655_s7] ss:$0 sm:$0xff] }
  0x3f   :  { %v342_v58 = vld [vmem:[%s656_s8] ss:$0 sm:$0xff]  ;;  %p477_p0 = pnand %p476_p13, %p470_p10 }
  0x40   :  { %388 = vmatpush3.bf16.msk.msra.mxu1 %vm599_vm3, %v386_v22 }
  0x41   :  { %362 = vmatmul.mubr.msk.f32.vlgmr.msra.gmra.mrb[0].mxu0 %vm84_vm4, %v605_v9 }
 0x114   :  { %v158_v11 = vpop.f32.mrb[0].mxu0 }
 0x115   :  { %v159_v12 = vadd.f32 %v333_v10, %v158_v11  ;;  %v363_v13 = vpop.f32.mrb[1].mxu0 }
 0x117   :  { %v162_v14 = vsel %vm84_vm4, %v159_v12, 0.0  ;;  %v165_v15 = vmul.f32 %v159_v12, %v159_v12 }
 0x118   :  { %163 = vadd.xlane.f32.xlu0 %v162_v14 }
 0x119   :  { %v166_v16 = vsel %vm84_vm4, %v165_v15, 0.0 }
 0x11c   :  { %167 = vadd.xlane.f32.xlu0 %v166_v16 }
 0x1a5   :  { %v164_v23 = vpop.xlane.xlu0 %163 }
 0x1a6   :  { %v169_v24 = vmul.f32 0.033333335, %v164_v23 }
 0x1a8   :  { %v171_v26 = vmul.f32 %v169_v24, %v169_v24  ;;  %v176_v31 = vsub.f32 %v159_v12, %v169_v24 }
 0x1a9   :  { %v168_v25 = vpop.xlane.xlu0 %167 }
 0x1aa   :  { %v170_v27 = vmul.f32 0.033333335, %v168_v25 }
 0x1ac   :  { %v172_v28 = vsub.f32 %v170_v27, %v171_v26 }
 0x1ae   :  { %v173_v29 = vmax.f32 %v172_v28, 0.0 }
 0x1b0   :  { %v174_v30 = vadd.f32 1e-05, %v173_v29 }
 0x1b2   :  { %399 = vrsqrt.f32 %v174_v30 }
 0x1bc   :  { %v400_v32 = vpop.eup %399 }
 0x1bd   :  { %v177_v34 = vmul.f32 %v400_v32, %v176_v31 }
 0x1bf   :  { %v185_v36 = vmul.f32 %v336_v33, %v177_v34 }
 0x1c1   :  { %v193_v37 = vadd.f32 %v337_v35, %v185_v36 }
 0x1c3   :  { %v194_v38 = vmax.f32 %v193_v37, 0.0 }
 0x1c5   :  { %373 = vmatmul.mubr.msk.f32.vlgmr.msra.gmra.mrb[0].mxu1 %vm84_vm4, %v194_v38 }
 0x298   :  { %v278_v40 = vpop.f32.mrb[0].mxu1 }
 0x299   :  { %v279_v41 = vadd.f32 %v338_v39, %v278_v40  ;;  %v374_v42 = vpop.f32.mrb[1].mxu1 }
 0x29b   :  { %v282_v43 = vsel %vm84_vm4, %v279_v41, 0.0  ;;  %v285_v44 = vmul.f32 %v279_v41, %v279_v41 }
 0x29c   :  { %283 = vadd.xlane.f32.xlu1 %v282_v43 }
 0x29d   :  { %v286_v45 = vsel %vm84_vm4, %v285_v44, 0.0 }
 0x2a0   :  { %287 = vadd.xlane.f32.xlu1 %v286_v45 }
 0x329   :  { %v284_v46 = vpop.xlane.xlu1 %283 }
 0x32a   :  { %v289_v47 = vmul.f32 0.033333335, %v284_v46 }
 0x32c   :  { %v291_v49 = vmul.f32 %v289_v47, %v289_v47  ;;  %v296_v54 = vsub.f32 %v279_v41, %v289_v47 }
 0x32d   :  { %v288_v48 = vpop.xlane.xlu1 %287 }
 0x32e   :  { %v290_v50 = vmul.f32 0.033333335, %v288_v48 }
 0x330   :  { %v292_v51 = vsub.f32 %v290_v50, %v291_v49 }
 0x332   :  { %v293_v52 = vmax.f32 %v292_v51, 0.0 }
 0x334   :  { %v294_v53 = vadd.f32 1e-05, %v293_v52 }
 0x336   :  { %401 = vrsqrt.f32 %v294_v53 }
 0x340   :  { %v402_v55 = vpop.eup %401 }
 0x341   :  { %v297_v57 = vmul.f32 %v402_v55, %v296_v54 }
 0x343   :  { %v305_v59 = vmul.f32 %v341_v56, %v297_v57 }
 0x345   :  { %v313_v60 = vadd.f32 %v342_v58, %v305_v59 }
 0x347   :  { %v314_v61 = vmax.f32 %v313_v60, 0.0 }
 0x349   :  { %v315_v62 = vadd.f32 %v314_v61, %v605_v9 }
 0x34b   :  { %316 = vst.msk [vmem:[#allocation8] sm:$0xff] %vm84_vm4, %v315_v62 }
 0x34c   :  { %480 = shalt.err (!%p477_p0)
}
 0x34d   :  { %s481_s8 = scalar_lea.hbm %s657_s9, 128 }
 0x34e   :  { %p482_p1 = scmp.ne.s32.totalorder %s657_s9, %s481_s8  ;;  %p485_p2 = scmp.lt.u32.totalorder %s481_s8, %s657_s9 }
 0x350   :  { %p487_p3 = pnand %p485_p2, %p482_p1 }
 0x352   :  { %490 = shalt.err (!%p487_p3)
}
 0x353   :  { %326 = dma.vmem_to_hbm [thread:$0]  %s324_s12, 128, %s657_s9, [#allocation4]  }
 0x354   :  { %495 = dma.done.wait [#allocation4], 128  }
 0x355   :  { %496 = vsyncadd [#allocation4], 4294967168 }
 0x356   :  { %330 = vsyncpa [#allocation3], 1 }
 0x357   :  { %331 = vsyncpa [#allocation6], 1 }
 0x358   :  { %332 = vsyncpa [#allocation4], 1 }

</bundles_post_ra>
